<compile_context>
chip_gen: v7x
topology: tpu7x:2x2x1
jax: 0.10.0
libtpu: 0.0.40
codegen_flags: <defaults>
</compile_context>

<pallas_src>
import jax
import jax.numpy as jnp
from jax.experimental import pallas as pl
from jax.experimental.pallas import tpu as pltpu


_VMEM_LIMIT = 48 * 1024 * 1024   # safe on v7x (64 MiB physical); plenty on v5e/v6e (128 MiB)


def _round_up(x, m):
    return (x + m - 1) // m * m


# ---------------------------------------------------------------------------
# Kernel 1: weight-resident dense layer  y = x @ W^T + b  (bf16 MXU, f32 accumulation)
# ---------------------------------------------------------------------------
def _linear_kernel(x_ref, wt_ref, b_ref, o_ref):
    acc = jnp.dot(x_ref[...], wt_ref[...], preferred_element_type=jnp.float32)
    o_ref[...] = (acc + b_ref[...]).astype(o_ref.dtype)


def linear(x2d, wt_bf16, b_f32, out_dtype=jnp.bfloat16):
    """x2d: (M, K) float; wt_bf16: (K, Nout) bf16 (pre-transposed); b_f32: (Nout,) f32."""
    M, K = x2d.shape
    Nout = wt_bf16.shape[1]
    # TODO(synk): if K*Nout ever grows beyond a few MiB of VMEM, reintroduce Nout tiling /
    # a K reduction axis; all ViT sizes here (K<=768, Nout<=2304, ~3.4 MiB bf16) fit easily.

    tm = 256 if M >= 256 else _round_up(M, 8)
    M_pad = _round_up(M, tm)
    x_in = x2d.astype(jnp.bfloat16)
    if M_pad != M:
        x_in = jnp.pad(x_in, ((0, M_pad - M), (0, 0)))

    out = pl.pallas_call(
        _linear_kernel,
        out_shape=jax.ShapeDtypeStruct((M_pad, Nout), out_dtype),
        grid_spec=pltpu.PrefetchScalarGridSpec(
            num_scalar_prefetch=0,
            grid=(M_pad // tm,),
            in_specs=[
                pl.BlockSpec((tm, K), lambda i: (i, 0)),      # x rows stream
                pl.BlockSpec((K, Nout), lambda i: (0, 0)),    # weight resident: DMA'd once
                pl.BlockSpec((1, Nout), lambda i: (0, 0)),    # bias resident
            ],
            out_specs=pl.BlockSpec((tm, Nout), lambda i: (i, 0)),
        ),
        compiler_params=pltpu.CompilerParams(
            dimension_semantics=("parallel",),                # megacore-splits the M axis
            vmem_limit_bytes=_VMEM_LIMIT,
        ),
    )(x_in, wt_bf16, b_f32.reshape(1, Nout))
    return out[:M] if M_pad != M else out


# ---------------------------------------------------------------------------
# Kernel 2: scaled dot-product attention, all heads per (batch, q-block) step.
# Head split (q/k/v column blocks of the fused qkv activation) and head merge
# (ctx written straight into (B, n_pad, C)) are done inside the kernel; the
# wrapper performs NO transposes / HBM round-trips.
# ---------------------------------------------------------------------------
def _make_attn_kernel(heads, head_dim, n_real, n_pad):
    masked = n_pad > n_real

    def kernel(q_ref, k_ref, v_ref, attn_ref, ctx_ref):
        # q_ref : (1, tq, C) bf16 (softmax scale already folded into q via the qkv weight)
        # k_ref, v_ref: (1, n_pad, C) bf16
        # attn_ref: (1, H, tq, n_pad)   ctx_ref: (1, tq, C)
        if masked:
            key_ok = jax.lax.broadcasted_iota(jnp.int32, (1, n_pad), 1) < n_real

        ctx_cols = []
        for h in range(heads):                         # static unroll over heads
            lo = h * head_dim
            # NOTE(v5e): for head_dim < 128 these are sub-lane-width loads; the stores
            # below are coalesced into one lane-dense (tq, C) write which is what matters.
            q = q_ref[0, :, lo:lo + head_dim]          # (tq, D)    bf16
            k = k_ref[0, :, lo:lo + head_dim]          # (n_pad, D) bf16
            v = v_ref[0, :, lo:lo + head_dim]          # (n_pad, D) bf16

            # contract last dims directly: no materialized k transpose (MXU takes it)
            s = jax.lax.dot_general(q, k, (((1,), (1,)), ((), ())),
                                    preferred_element_type=jnp.float32)   # (tq, n_pad) f32
            if masked:
                s = jnp.where(key_ok, s, -1e30)        # padded keys -> zero probability

            s = s - jnp.max(s, axis=-1, keepdims=True)
            p = jnp.exp(s)
            # exact normalization: attn is an exported output, rows must sum to ~1
            inv = pl.reciprocal(jnp.sum(p, axis=-1, keepdims=True), approx=False)
            p = p * inv

            attn_ref[0, h] = p.astype(attn_ref.dtype)
            ctx_cols.append(
                jnp.dot(p.astype(jnp.bfloat16), v, preferred_element_type=jnp.float32))

        # single lane-dense (tq, C) store — avoids per-head sub-128-lane masked stores
        ctx_ref[0] = jnp.concatenate(ctx_cols, axis=-1).astype(ctx_ref.dtype)

    return kernel


def attention_core(qkv, heads, n_real, n_pad, tq, attn_dtype):
    """qkv: (B, n_pad, 3C) bf16 fused projection -> (attn (B,H,n_pad,n_pad), ctx (B,n_pad,C))."""
    B, _, threeC = qkv.shape
    C = threeC // 3
    D = C // heads
    # TODO(synk): a flash-style KV-tiled (online-softmax) pass is impossible here because the
    # module must return the fully-normalized attn matrix, so KV stays resident per batch.

    return pl.pallas_call(
        _make_attn_kernel(heads, D, n_real, n_pad),
        out_shape=(
            jax.ShapeDtypeStruct((B, heads, n_pad, n_pad), attn_dtype),
            jax.ShapeDtypeStruct((B, n_pad, C), jnp.bfloat16),
        ),
        grid_spec=pltpu.PrefetchScalarGridSpec(
            num_scalar_prefetch=0,
            grid=(B, n_pad // tq),
            in_specs=[
                # three views of the same fused qkv activation: only live columns are DMA'd
                pl.BlockSpec((1, tq, C), lambda b, i: (b, i, 0)),      # q rows (col block 0)
                pl.BlockSpec((1, n_pad, C), lambda b, i: (b, 0, 1)),   # full K (col block 1)
                pl.BlockSpec((1, n_pad, C), lambda b, i: (b, 0, 2)),   # full V (col block 2)
            ],
            out_specs=(
                pl.BlockSpec((1, heads, tq, n_pad), lambda b, i: (b, 0, i, 0)),
                pl.BlockSpec((1, tq, C), lambda b, i: (b, i, 0)),
            ),
        ),
        compiler_params=pltpu.CompilerParams(
            dimension_semantics=("parallel", "parallel"),
            vmem_limit_bytes=_VMEM_LIMIT,
        ),
    )(qkv, qkv, qkv)


# ---------------------------------------------------------------------------
# Module-level forward (mirrors torchreid.models.vit.Attention.forward, eval mode)
# ---------------------------------------------------------------------------
def attention_forward(x, params, heads, attn_dtype=jnp.float32):
    B, N, C = x.shape
    D = C // heads
    scale = float(D) ** (-0.5)

    # --- token-axis padding so every block stays (8,128)-aligned (e.g. ViT N=197 -> 256) ---
    if N >= 128:
        tq = 128
        n_pad = _round_up(N, tq)
    else:
        tq = _round_up(N, 8)
        n_pad = tq
    xp = x if n_pad == N else jnp.pad(x, ((0, 0), (0, n_pad - N), (0, 0)))

    # --- parameter prep (would be done ONCE at load time in a real deployment) ---
    # fold the softmax scale into the q rows of the qkv projection: zero runtime cost
    scale_vec = jnp.concatenate(
        [jnp.full((C,), scale, jnp.float32), jnp.ones((2 * C,), jnp.float32)])
    qkv_wt = (params["qkv_w"].astype(jnp.float32) * scale_vec[:, None]).T.astype(jnp.bfloat16)
    qkv_b = params["qkv_b"].astype(jnp.float32) * scale_vec
    proj_wt = params["proj_w"].T.astype(jnp.bfloat16)
    proj_b = params["proj_b"].astype(jnp.float32)

    # qkv projection (weight-resident Pallas linear); bf16 intermediate halves HBM traffic
    qkv = linear(xp.reshape(B * n_pad, C), qkv_wt, qkv_b, out_dtype=jnp.bfloat16)
    qkv = qkv.reshape(B, n_pad, 3 * C)              # metadata-only reshape (no transpose)

    # fused head-split attention + head-merge (no wrapper transposes)
    attn, ctx = attention_core(qkv, heads, N, n_pad, tq, attn_dtype)
    # attn_drop: identity in eval mode.
    # TODO(synk): training-mode dropout would use pltpu.prng_seed + pltpu.stateful_bernoulli.

    # output projection (weight-resident Pallas linear)
    out = linear(ctx.reshape(B * n_pad, C), proj_wt, proj_b, out_dtype=x.dtype)
    out = out.reshape(B, n_pad, C)
    # proj_drop: identity in eval mode.

    if n_pad != N:
        out = out[:, :N]
        attn = attn[:, :, :N, :N]
    return out, attn


# ---------------------------------------------------------------------------
# Pure-JAX f32 reference for verification
# ---------------------------------------------------------------------------
def attention_forward_ref(x, params, heads):
    B, N, C = x.shape
    D = C // heads
    scale = float(D) ** (-0.5)
    qkv = x @ params["qkv_w"].T + params["qkv_b"]
    qkv = qkv.reshape(B, N, 3, heads, D).transpose(2, 0, 3, 1, 4)
    q, k, v = qkv[0], qkv[1], qkv[2]
    s = jnp.einsum("bhnd,bhmd->bhnm", q, k) * scale
    attn = jax.nn.softmax(s, axis=-1)
    ctx = jnp.einsum("bhnm,bhmd->bhnd", attn, v)
    ctx = ctx.transpose(0, 2, 1, 3).reshape(B, N, C)
    out = ctx @ params["proj_w"].T + params["proj_b"]
    return out, attn


if __name__ == "__main__":
    # Small shapes: B=2, N=13 tokens (non-multiple of 8 -> exercises padding/masking),
    # dim=128 (lane-aligned channels), heads=4 (head_dim=32).
    B, N, C, H = 2, 13, 128, 4
    key = jax.random.PRNGKey(0)
    k1, k2, k3, k4, k5 = jax.random.split(key, 5)

    x = jax.random.normal(k1, (B, N, C), dtype=jnp.float32)
    params = {
        "qkv_w": jax.random.normal(k2, (3 * C, C), dtype=jnp.float32) * 0.05,
        "qkv_b": jax.random.normal(k3, (3 * C,), dtype=jnp.float32) * 0.05,
        "proj_w": jax.random.normal(k4, (C, C), dtype=jnp.float32) * 0.05,
        "proj_b": jax.random.normal(k5, (C,), dtype=jnp.float32) * 0.05,
    }

    out, attn = attention_forward(x, params, H)
    out = jax.block_until_ready(out)
    attn = jax.block_until_ready(attn)

    out_ref, attn_ref = attention_forward_ref(x, params, H)
    assert out.shape == (B, N, C) and attn.shape == (B, H, N, N)
    # bf16 MXU inputs -> compare against the f32 reference with loose tolerance.
    assert jnp.allclose(out, out_ref, atol=2e-2, rtol=2e-2), \
        float(jnp.max(jnp.abs(out - out_ref)))
    assert jnp.allclose(attn, attn_ref, atol=2e-2, rtol=2e-2), \
        float(jnp.max(jnp.abs(attn - attn_ref)))

    print("KERNEL_OK")
</pallas_src>

<mosaic_0001>
module attributes {stable_mosaic.version = 11 : i64} {
  func.func @_linear_kernel(%arg0: i32, %arg1: memref<32x128xbf16, #tpu.memory_space<vmem>>, %arg2: memref<128x384xbf16, #tpu.memory_space<vmem>>, %arg3: memref<1x384xf32, #tpu.memory_space<vmem>>, %arg4: memref<32x384xbf16, #tpu.memory_space<vmem>>) attributes {dimension_semantics = [#tpu.dimension_semantics<parallel>], iteration_bounds = array<i64: 1>, scalar_prefetch = 0 : i64, scratch_operands = 0 : i64, tpu.core_type = #tpu.core_type<tc>, window_params = [{transform_indices = @transform_0, window_bounds = array<i64: 32, 128>}, {pipeline_mode = #tpu.pipeline_mode<synchronous>, transform_indices = @transform_1, window_bounds = array<i64: 128, 384>}, {pipeline_mode = #tpu.pipeline_mode<synchronous>, transform_indices = @transform_2, window_bounds = array<i64: 1, 384>}, {transform_indices = @transform_3, window_bounds = array<i64: 32, 384>}]} {
    %c0 = arith.constant 0 : index
    %c0_0 = arith.constant 0 : index
    %0 = vector.load %arg1[%c0, %c0_0] : memref<32x128xbf16, #tpu.memory_space<vmem>>, vector<32x128xbf16>
    %c0_1 = arith.constant 0 : index
    %c0_2 = arith.constant 0 : index
    %1 = vector.load %arg2[%c0_1, %c0_2] : memref<128x384xbf16, #tpu.memory_space<vmem>>, vector<128x384xbf16>
    %cst = arith.constant dense<0.000000e+00> : vector<32x384xf32>
    %2 = tpu.matmul %0, %1, %cst {dimension_numbers = #tpu.dot_dimension_numbers<[1], [0], [0], [1], [0, 0, 1, 1], [], []>} : vector<32x128xbf16>, vector<128x384xbf16>, vector<32x384xf32> -> vector<32x384xf32>
    %c0_3 = arith.constant 0 : index
    %c0_4 = arith.constant 0 : index
    %3 = vector.load %arg3[%c0_3, %c0_4] : memref<1x384xf32, #tpu.memory_space<vmem>>, vector<1x384xf32>
    %4 = vector.broadcast %3 : vector<1x384xf32> to vector<32x384xf32>
    %5 = arith.addf %2, %4 : vector<32x384xf32>
    %6 = arith.truncf %5 : vector<32x384xf32> to vector<32x384xbf16>
    %c0_5 = arith.constant 0 : index
    %c0_6 = arith.constant 0 : index
    %7 = vector.load %arg4[%c0_5, %c0_6] : memref<32x384xbf16, #tpu.memory_space<vmem>>, vector<32x384xbf16>
    tpu.vector_store %arg4[%c0_5, %c0_6], %6 {strides = array<i32>} : memref<32x384xbf16, #tpu.memory_space<vmem>>, vector<32x384xbf16>,
    return
  }
  func.func @transform_0(%arg0: i32) -> (i32, i32) {
    %c0_i32 = arith.constant 0 : i32
    %c0_i32_0 = arith.constant 0 : i32
    return %arg0, %c0_i32 : i32, i32
  }
  func.func @transform_1(%arg0: i32) -> (i32, i32) {
    %c0_i32 = arith.constant 0 : i32
    %c0_i32_0 = arith.constant 0 : i32
    %c0_i32_1 = arith.constant 0 : i32
    return %c0_i32, %c0_i32_0 : i32, i32
  }
  func.func @transform_2(%arg0: i32) -> (i32, i32) {
    %c0_i32 = arith.constant 0 : i32
    %c0_i32_0 = arith.constant 0 : i32
    %c0_i32_1 = arith.constant 0 : i32
    return %c0_i32, %c0_i32_0 : i32, i32
  }
  func.func @transform_3(%arg0: i32) -> (i32, i32) {
    %c0_i32 = arith.constant 0 : i32
    %c0_i32_0 = arith.constant 0 : i32
    return %arg0, %c0_i32 : i32, i32
  }
}

</mosaic_0001>

<bundles_post_ra>
// kernel: tpu_custom_call.1
= control target key start
LH: loop header
LB: loop body
LE: loop exit
PB: predicated region body
PF: predicated region fallthrough
CT: control target
= control target key end

     0   :  { %8 = vsyncpa [#allocation3], 0  ;;  %s664_s0 = inlined_call_operand.hbm [shape: bf16[32,128], index: 0, kind: input, shape index: {}]   ;;  %s665_s1 = inlined_call_operand.hbm [shape: bf16[128,384], index: 1, kind: input, shape index: {}]   ;;  %s666_s2 = inlined_call_operand.vmem [shape: f32[1,384], index: 2, kind: input, shape index: {}]   ;;  %s667_s3 = inlined_call_operand.hbm [shape: bf16[32,384], index: 3, kind: output, shape index: {}]  }
   0x1   :  { %9 = vsyncpa [#allocation6], 0 }
   0x2   :  { %10 = vsyncpa [#allocation4], 0  ;;  %s591_s12 = smov [#allocation2]   ;;  %s519_s16 = scalar_lea.hbm %s664_s0, 256 }
   0x3   :  { %s16_s13 = sshll.u32 %s591_s12, 4  ;;  %p520_p0 = scmp.ne.s32.totalorder %s664_s0, %s519_s16  ;;  %s17_s13 = int_to_ptr.vmem [resolvable:$true] %s16_s13 }
   0x4   :  { %p523_p1 = scmp.lt.u32.totalorder %s519_s16, %s664_s0 }
   0x6   :  { %p525_p2 = pnand %p523_p1, %p520_p0 }
   0x8   :  { %528 = shalt.err (!%p525_p2)
}
   0x9   :  { %s529_s21 = scalar_lea.vmem %s17_s13, 256  ;;  %p534_p4 = scmp.lt.s32.totalorder %s17_s13, %s17_s13 }
   0xa   :  { %p530_p3 = scmp.ne.s32.totalorder %s17_s13, %s529_s21  ;;  %p535_p5 = scmp.lt.s32.totalorder %s529_s21, %s529_s21 }
   0xc   :  { %p536_p6 = por %p535_p5, %p534_p4 }
   0xe   :  { %p537_p7 = pnand %p536_p6, %p530_p3 }
  0x10   :  { %540 = shalt.err (!%p537_p7)
}
  0x11   :  { %s592_s22 = smov 64   ;;  %s593_s23 = smov 4  }
  0x12   :  { %22 = dma.hbm_to_vmem [thread:$0]  %s664_s0, 256, %s17_s13, [#allocation3], %s592_s22, %s592_s22, %s593_s23  }
  0x13   :  { %s594_s26 = smov [#allocation5]   ;;  %s541_s30 = scalar_lea.hbm %s665_s1, 3072 }
  0x14   :  { %s28_s27 = sshll.u32 %s594_s26, 4  ;;  %p542_p8 = scmp.ne.s32.totalorder %s665_s1, %s541_s30  ;;  %s29_s27 = int_to_ptr.vmem [resolvable:$true] %s28_s27 }
  0x15   :  { %p545_p9 = scmp.lt.u32.totalorder %s541_s30, %s665_s1 }
  0x17   :  { %p547_p10 = pnand %p545_p9, %p542_p8 }
  0x19   :  { %550 = shalt.err (!%p547_p10)
}
  0x1a   :  { %s551_s8 = scalar_lea.vmem %s29_s27, 3072  ;;  %p556_p12 = scmp.lt.s32.totalorder %s29_s27, %s29_s27 }
  0x1b   :  { %p552_p11 = scmp.ne.s32.totalorder %s29_s27, %s551_s8  ;;  %p557_p13 = scmp.lt.s32.totalorder %s551_s8, %s551_s8 }
  0x1d   :  { %p558_p0 = por %p557_p13, %p556_p12 }
  0x1f   :  { %p559_p1 = pnand %p558_p0, %p552_p11 }
  0x21   :  { %562 = shalt.err (!%p559_p1)
}
  0x22   :  { %s595_s0 = smov 192   ;;  %s596_s9 = smov 12  }
  0x23   :  { %34 = dma.hbm_to_vmem [thread:$0]  %s665_s1, 3072, %s29_s27, [#allocation6], %s595_s0, %s595_s0, %s596_s9  }
  0x24   :  { %585 = dma.done.wait [#allocation3], 256  }
  0x25   :  { %586 = vsyncadd [#allocation3], 4294967040 }
  0x26   :  { %587 = dma.done.wait [#allocation6], 3072  }
  0x27   :  { %588 = vsyncadd [#allocation6], 4294964224  ;;  %v597_v0 = vmov 0   ;;  %v485_v1 = vld [vmem:[#allocation5 + $0x4] ss:$12 sps:$4 sm:$0xff]   ;;  %v518_v26 = vld [vmem:[#allocation2 + $0x8] sm:$0xff]   ;;  %v82_v27 = vlaneseq }
  0x28   :  { %269 = vmatprep.mubr.bf16.mxu0 %v597_v0  ;;  %v487_v2 = vld [vmem:[#allocation5] ss:$12 sps:$4 sm:$0xff]   ;;  %237 = vmatprep.subr.bf16.mxu0 %v485_v1  ;;  %v488_v3 = vld [vmem:[#allocation5 + $0x1c] ss:$12 sps:$4 sm:$0xff]   ;;  %v490_v4 = vld [vmem:[#allocation5 + $0x18] ss:$12 sps:$4 sm:$0xff]  }
  0x29   :  { %238 = vmatpush1.bf16.msra.mxu0 %v487_v2  ;;  %v491_v5 = vld [vmem:[#allocation5 + $0x8] ss:$12 sps:$4 sm:$0xff]   ;;  %v495_v7 = vld [vmem:[#allocation5 + $0x20] ss:$12 sps:$4 sm:$0xff]   ;;  %v494_v8 = vld [vmem:[#allocation5 + $0x30] ss:$12 sps:$4 sm:$0xff]  }
  0x2a   :  { %239 = vmatprep.subr.bf16.mxu0 %v488_v3  ;;  %v492_v6 = vld [vmem:[#allocation5 + $0x34] ss:$12 sps:$4 sm:$0xff]   ;;  %457 = vmatprep.subr.bf16.mxu1 %v491_v5  ;;  %v496_v9 = vld [vmem:[#allocation5 + $0x4c] ss:$12 sps:$4 sm:$0xff]   ;;  %v503_v12 = vld [vmem:[#allocation5 + $0x50] ss:$12 sps:$4 sm:$0xff]  }
  0x2b   :  { %458 = vmatpush3.bf16.msra.mxu1 %v491_v5  ;;  %v499_v10 = vld [vmem:[#allocation5 + $0x38] ss:$12 sps:$4 sm:$0xff]   ;;  %v498_v11 = vld [vmem:[#allocation5 + $0x48] ss:$12 sps:$4 sm:$0xff]   ;;  %v502_v14 = vld [vmem:[#allocation5 + $0x60] ss:$12 sps:$4 sm:$0xff]  }
  0x2c   :  { %459 = vmatprep.subr.bf16.mxu1 %v495_v7  ;;  %v500_v13 = vld [vmem:[#allocation5 + $0x64] ss:$12 sps:$4 sm:$0xff]   ;;  %v507_v15 = vld [vmem:[#allocation5 + $0x68] ss:$12 sps:$4 sm:$0xff]   ;;  %v511_v19 = vld [vmem:[#allocation5 + $0x80] ss:$12 sps:$4 sm:$0xff]  }
  0x2d   :  { %240 = vmatpush1.bf16.msra.mxu0 %v490_v4  ;;  %v504_v16 = vld [vmem:[#allocation5 + $0x7c] ss:$12 sps:$4 sm:$0xff]   ;;  %v506_v17 = vld [vmem:[#allocation5 + $0x78] ss:$12 sps:$4 sm:$0xff]   ;;  %v516_v18 = vld [vmem:[#allocation2] sm:$0xff]   ;;  %v83_v28 = vshrl.u32 %v82_v27, 7 }
  0x2e   :  { %241 = vmatprep.subr.bf16.mxu0 %v492_v6  ;;  %v508_v20 = vld [vmem:[#allocation5 + $0x94] ss:$12 sps:$4 sm:$0xff]   ;;  %473 = vmatprep.mubr.bf16.mxu1 %v516_v18  ;;  %v510_v21 = vld [vmem:[#allocation5 + $0x90] ss:$12 sps:$4 sm:$0xff]   ;;  %v515_v22 = vld [vmem:[#allocation5 + $0x98] ss:$12 sps:$4 sm:$0xff]  }
  0x2f   :  { %460 = vmatpush3.bf16.msra.mxu1 %v495_v7  ;;  %v512_v23 = vld [vmem:[#allocation5 + $0xac] ss:$12 sps:$4 sm:$0xff]   ;;  %v514_v24 = vld [vmem:[#allocation5 + $0xa8] ss:$12 sps:$4 sm:$0xff]   ;;  %v517_v25 = vld [vmem:[#allocation5 + $0xb0] ss:$12 sps:$4 sm:$0xff]  }
  0x30   :  { %461 = vmatprep.subr.bf16.mxu1 %v499_v10  ;;  %v84_v29 = vsub.s32 0, %v83_v28  ;;  %v80_v30 = vld [vmem:[%s666_s2] sm:$0x7]  ;;  %v88_v31 = vsub.s32 1, %v83_v28  ;;  %v92_v32 = vsub.s32 2, %v83_v28  ;;  %s598_s2 = smov [#allocation7]  }
  0x31   :  { %242 = vmatpush1.bf16.msra.mxu0 %v494_v8  ;;  %s392_s13 = sshll.u32 %s598_s2, 4  ;;  %s393_s13 = int_to_ptr.vmem [resolvable:$true] %s392_s13 }
  0x32   :  { %243 = vmatprep.subr.bf16.mxu0 %v496_v9  ;;  %v85_v33 = vrot.slane %v80_v30, %v84_v29  ;;  %v89_v34 = vrot.slane %v80_v30, %v88_v31  ;;  %v93_v36 = vrot.slane %v80_v30, %v92_v32  ;;  %s563_s14 = scalar_lea.vmem %s393_s13, 768  ;;  %p568_p3 = scmp.lt.s32.totalorder %s393_s13, %s393_s13 }
  0x33   :  { %462 = vmatpush3.bf16.msra.mxu1 %v499_v10  ;;  %p564_p2 = scmp.ne.s32.totalorder %s393_s13, %s563_s14  ;;  %p569_p4 = scmp.lt.s32.totalorder %s563_s14, %s563_s14 }
  0x34   :  { %463 = vmatprep.subr.bf16.mxu1 %v503_v12 }
  0x35   :  { %244 = vmatpush1.bf16.msra.mxu0 %v498_v11  ;;  %p570_p5 = por %p569_p4, %p568_p3 }
  0x36   :  { %245 = vmatprep.subr.bf16.mxu0 %v500_v13 }
  0x37   :  { %464 = vmatpush3.bf16.msra.mxu1 %v503_v12  ;;  %p571_p6 = pnand %p570_p5, %p564_p2 }
  0x38   :  { %465 = vmatprep.subr.bf16.mxu1 %v507_v15 }
  0x39   :  { %246 = vmatpush1.bf16.msra.mxu0 %v502_v14 }
  0x3a   :  { %247 = vmatprep.subr.bf16.mxu0 %v504_v16 }
  0x3b   :  { %466 = vmatpush3.bf16.msra.mxu1 %v507_v15 }
  0x3c   :  { %467 = vmatprep.subr.bf16.mxu1 %v511_v19 }
  0x3d   :  { %248 = vmatpush1.bf16.msra.mxu0 %v506_v17 }
  0x3e   :  { %249 = vmatprep.subr.bf16.mxu0 %v508_v20 }
  0x3f   :  { %468 = vmatpush3.bf16.msra.mxu1 %v511_v19 }
  0x40   :  { %469 = vmatprep.subr.bf16.mxu1 %v515_v22 }
  0x41   :  { %250 = vmatpush1.bf16.msra.mxu0 %v510_v21 }
  0x42   :  { %251 = vmatprep.subr.bf16.mxu0 %v512_v23 }
  0x43   :  { %470 = vmatpush3.bf16.msra.mxu1 %v515_v22 }
  0x44   :  { %471 = vmatprep.subr.bf16.mxu1 %v517_v25 }
  0x45   :  { %252 = vmatpush1.bf16.msra.mxu0 %v514_v24 }
  0x47   :  { %472 = vmatpush3.bf16.msra.mxu1 %v517_v25 }
  0x48   :  { %270 = vmatmul.mubr.bf16.vlgmr.msra.gmra.mrb[0].mxu0 %v516_v18 }
  0x49   :  { %279 = vmatprep.mubr.bf16.mxu0 %v597_v0 }
  0x4a   :  { %474 = vmatmul.mubr.bf16.vlgmr.msra.gmra.mrb[0].mxu1 %v518_v26 }
  0x50   :  { %280 = vmatmul.mubr.bf16.gmra.mrb[4].mxu0 %v518_v26 }
 0x11b   :  { %v271_v35 = vpop.f32.mrb[0].mxu0 }
 0x11c   :  { %v272_v37 = vadd.f32 %v271_v35, %v85_v33  ;;  %v273_v38 = vpop.f32.mrb[1].mxu0 }
 0x11d   :  { %v274_v39 = vadd.f32 %v273_v38, %v89_v34  ;;  %v275_v40 = vpop.f32.mrb[2].mxu0  ;;  %v475_v43 = vpop.f32.mrb[0].mxu1 }
 0x11e   :  { %v276_v41 = vadd.f32 %v275_v40, %v85_v33  ;;  %v277_v42 = vpop.f32.mrb[3].mxu0  ;;  %v333_v46 = vadd.f32 %v475_v43, %v93_v36  ;;  %v324_v47 = vpop.f32.mrb[1].mxu1 }
 0x11f   :  { %v439_v44 = vpack.c.bf16 %v274_v39, %v272_v37  ;;  %v278_v45 = vadd.f32 %v277_v42, %v89_v34  ;;  %v325_v48 = vadd.f32 %v324_v47, %v93_v36  ;;  %v476_v49 = vpop.f32.mrb[2].mxu1 }
 0x120   :  { %v444_v51 = vpack.c.bf16 %v333_v46, %v333_v46  ;;  %v336_v52 = vadd.f32 %v476_v49, %v93_v36  ;;  %v327_v53 = vpop.f32.mrb[3].mxu1 }
 0x121   :  { %379 = vst [vmem:[#allocation7] sm:$0xff] %v439_v44  ;;  %v441_v50 = vpack.c.bf16 %v278_v45, %v276_v41  ;;  %v440_v54 = vpack.c.bf16 %v325_v48, %v325_v48  ;;  %v328_v55 = vadd.f32 %v327_v53, %v93_v36 }
 0x122   :  { %384 = vst [vmem:[#allocation7 + $0x20] sm:$0xf] %v444_v51  ;;  %v446_v56 = vpack.c.bf16 %v336_v52, %v336_v52 }
 0x123   :  { %381 = vst [vmem:[#allocation7 + $0xc] sm:$0xff] %v441_v50  ;;  %v281_v57 = vpop.f32.mrb[4].mxu0  ;;  %380 = vst [vmem:[#allocation7 + $0x8] sm:$0xf] %v440_v54  ;;  %v442_v59 = vpack.c.bf16 %v328_v55, %v328_v55 }
 0x124   :  { %v282_v58 = vadd.f32 %v281_v57, %v85_v33  ;;  %v283_v60 = vpop.f32.mrb[5].mxu0  ;;  %386 = vst [vmem:[#allocation7 + $0x2c] sm:$0xf] %v446_v56 }
 0x125   :  { %v284_v61 = vadd.f32 %v283_v60, %v89_v34  ;;  %v285_v62 = vpop.f32.mrb[6].mxu0  ;;  %382 = vst [vmem:[#allocation7 + $0x14] sm:$0xf] %v442_v59 }
 0x126   :  { %v286_v63 = vadd.f32 %v285_v62, %v85_v33  ;;  %v287_v0 = vpop.f32.mrb[7].mxu0 }
 0x127   :  { %v443_v1 = vpack.c.bf16 %v284_v61, %v282_v58  ;;  %v288_v2 = vadd.f32 %v287_v0, %v89_v34 }
 0x129   :  { %383 = vst [vmem:[#allocation7 + $0x18] sm:$0xff] %v443_v1  ;;  %v445_v3 = vpack.c.bf16 %v288_v2, %v286_v63 }
 0x12b   :  { %385 = vst [vmem:[#allocation7 + $0x24] sm:$0xff] %v445_v3 }
 0x12c   :  { %574 = shalt.err (!%p571_p6)
}
 0x12d   :  { %s575_s17 = scalar_lea.hbm %s667_s3, 768 }
 0x12e   :  { %p576_p7 = scmp.ne.s32.totalorder %s667_s3, %s575_s17  ;;  %p579_p8 = scmp.lt.u32.totalorder %s575_s17, %s667_s3 }
 0x130   :  { %p581_p9 = pnand %p579_p8, %p576_p7 }
 0x132   :  { %584 = shalt.err (!%p581_p9)
}
 0x133   :  { %398 = dma.vmem_to_hbm [thread:$0]  %s393_s13, 768, %s667_s3, [#allocation4], %s595_s0, %s595_s0, %s596_s9  }
 0x134   :  { %589 = dma.done.wait [#allocation4], 768  }
 0x135   :  { %590 = vsyncadd [#allocation4], 4294966528 }
 0x136   :  { %402 = vsyncpa [#allocation3], 1 }
 0x137   :  { %403 = vsyncpa [#allocation6], 1 }
 0x138   :  { %404 = vsyncpa [#allocation4], 1 }

</bundles_post_ra>
